<compile_context>
chip_gen: v6e
topology: v6e:2x2x1
jax: 0.10.0
libtpu: 0.0.40
codegen_flags: <defaults>
</compile_context>

<pallas_src>
import jax
import jax.numpy as jnp
from jax import lax
from jax.experimental import pallas as pl
from jax.experimental.pallas import tpu as pltpu

_K = 7
_PAD = _K // 2


def _widx(g, ci, kh, kw):
    """Flat index into the stacked (3, 2, 7, 7) folded conv weights."""
    return ((g * 2 + ci) * _K + kh) * _K + kw


# ----------------------------------------------------------------------------
# Pass 1: streamed ZPool (max, mean) along C / H / W over channel blocks
# ----------------------------------------------------------------------------
def _pool_kernel(x_ref, phw_ref, pcw_ref, phc_ref):
    ci = pl.program_id(1)
    xb = x_ref[0].astype(jnp.float32)            # (Ct, H, W), upcast block only
    Ct, H, W = xb.shape

    # --- hw gate: reduce over channels; accumulate across C-block grid steps.
    blk_max = jnp.max(xb, axis=0)                # (H, W) cross-vreg VPU max
    blk_sum = jnp.sum(xb, axis=0)                # (H, W) sum (divided by C later)

    @pl.when(ci == 0)
    def _():
        phw_ref[0, 0] = blk_max
        phw_ref[0, 1] = blk_sum

    @pl.when(ci > 0)
    def _():
        phw_ref[0, 0] = jnp.maximum(phw_ref[0, 0], blk_max)
        phw_ref[0, 1] = phw_ref[0, 1] + blk_sum

    # --- cw gate: reduce over H for this channel block (per-channel, no accum).
    pcw_ref[0, 0] = jnp.max(xb, axis=1)          # (Ct, W)  XLU sublane max
    ones_h = jnp.full((Ct, 1, H), 1.0 / H, dtype=jnp.float32)
    pcw_ref[0, 1] = jnp.einsum(                  # mean over H on the MXU
        'cmh,chw->cmw', ones_h, xb,
        preferred_element_type=jnp.float32)[:, 0, :]

    # --- hc gate: reduce over W for this channel block.
    phc_ref[0, 0] = jnp.max(xb, axis=2)          # (Ct, H)  XLU lane max
    ones_w = jnp.full((Ct, W, 1), 1.0 / W, dtype=jnp.float32)
    phc_ref[0, 1] = jnp.einsum(                  # mean over W on the MXU
        'chw,cwn->chn', xb, ones_w,
        preferred_element_type=jnp.float32)[..., 0]


# ----------------------------------------------------------------------------
# Pass 2: 7x7 conv (2->1) + folded BN + sigmoid on the small pooled maps
# ----------------------------------------------------------------------------
def _fill_padded(pad_ref, ch_max, ch_mean):
    """Zero the 3-wide border strips and write the (max, mean) interior."""
    d1 = pad_ref.shape[1] - 2 * _PAD
    d2 = pad_ref.shape[2] - 2 * _PAD
    p = _PAD
    pad_ref[:, 0:p, :] = jnp.zeros((2, p, d2 + 2 * p), jnp.float32)
    pad_ref[:, d1 + p:d1 + 2 * p, :] = jnp.zeros((2, p, d2 + 2 * p), jnp.float32)
    pad_ref[:, :, 0:p] = jnp.zeros((2, d1 + 2 * p, p), jnp.float32)
    pad_ref[:, :, d2 + p:d2 + 2 * p] = jnp.zeros((2, d1 + 2 * p, p), jnp.float32)
    pad_ref[0, p:p + d1, p:p + d2] = ch_max
    pad_ref[1, p:p + d1, p:p + d2] = ch_mean


def _conv2x1(pad_ref, w_ref, g, swap_kernel=False):
    """7x7 cross-correlation, 2 in channels -> 1 out channel (no bias).

    The lane-axis offset `j` is hoisted out of the inner loop: one lane-shifted
    view per (channel, j) pair, then 7 sublane-slice FMAs of that view.  Four
    independent partial accumulators break the serial FMA chain.
    If swap_kernel, the conv 'height' runs along the stored lane axis and the
    'width' along the stored sublane axis (hc gate stored as (C, H)).
    """
    d1 = pad_ref.shape[1] - 2 * _PAD
    d2 = pad_ref.shape[2] - 2 * _PAD
    acc = [jnp.zeros((d1, d2), jnp.float32) for _ in range(4)]
    for j in range(_K):                                 # lane-axis offset (hoisted)
        v0 = pad_ref[0, :, j:j + d2]                    # (d1+6, d2) lane-shifted view
        v1 = pad_ref[1, :, j:j + d2]
        for i in range(_K):                             # sublane-axis offset
            kh, kw = (j, i) if swap_kernel else (i, j)
            w0 = w_ref[_widx(g, 0, kh, kw)]             # weight on max channel
            w1 = w_ref[_widx(g, 1, kh, kw)]             # weight on mean channel
            k = i % 2
            acc[2 * k] = acc[2 * k] + w0 * v0[i:i + d1, :]
            acc[2 * k + 1] = acc[2 * k + 1] + w1 * v1[i:i + d1, :]
    return (acc[0] + acc[1]) + (acc[2] + acc[3])


def _gates_kernel(phw_ref, pcw_ref, phc_ref, w_ref, b_ref,
                  shw_ref, scw_ref, shc_ref, pad_hw, pad_cw, pad_hc):
    C = pcw_ref.shape[2]
    inv_c = jnp.float32(1.0 / C)
    # Borders are (re)zeroed here: this kernel runs once per batch on tiny maps,
    # and guarding on program_id==0 would be unsafe if the batch axis is split
    # across megacore TensorCores (scratch is per-core).
    _fill_padded(pad_hw, phw_ref[0, 0], phw_ref[0, 1] * inv_c)   # sum -> mean
    _fill_padded(pad_cw, pcw_ref[0, 0], pcw_ref[0, 1])
    _fill_padded(pad_hc, phc_ref[0, 0], phc_ref[0, 1])
    shw_ref[0] = jax.nn.sigmoid(_conv2x1(pad_hw, w_ref, 0) + b_ref[0])
    scw_ref[0] = jax.nn.sigmoid(_conv2x1(pad_cw, w_ref, 1) + b_ref[1])
    shc_ref[0] = jax.nn.sigmoid(_conv2x1(pad_hc, w_ref, 2, swap_kernel=True) + b_ref[2])


# ----------------------------------------------------------------------------
# Pass 3: finely tiled elementwise apply
# ----------------------------------------------------------------------------
def _apply_kernel(x_ref, shw_ref, scw_ref, shc_ref, o_ref):
    att = (shw_ref[0][None, :, :]
           + scw_ref[0][:, None, :]
           + shc_ref[0][:, :, None]) * jnp.float32(1.0 / 3.0)
    # Keep x in its native dtype (no full-block f32 duplicate of x).
    o_ref[0] = (x_ref[0] * att.astype(x_ref.dtype)).astype(o_ref.dtype)


# ----------------------------------------------------------------------------
# Wrapper
# ----------------------------------------------------------------------------
def _choose_c_tile(C, H, W, itemsize, target_bytes=2 * 2**20):
    """Channel tile: divides C and is a multiple of 8 (BlockSpec sublane rule
    for the (Ct, W)/(Ct, H) gate blocks) unless it equals C."""
    if C <= 8:
        return C
    per_c = max(1, H * W * itemsize)
    limit = max(8, min(C, target_bytes // per_c))
    best = None
    ct = 8
    while ct <= limit:
        if C % ct == 0:
            best = ct
        ct += 8
    return best if best is not None else C


def _vmem_limit(est_bytes):
    """Explicit scoped-VMEM budget: 2x margin over the static estimate."""
    return int(min(128 * 2**20, max(32 * 2**20, 2 * int(est_bytes))))


def ta_pallas(x, params, *, c_tile=None):
    """Triplet Attention forward.  x: (B, C, H, W), NCHW like PyTorch."""
    B, C, H, W = x.shape
    w_all, b_all = _fold_params(params)          # (3*2*7*7,) f32, (3,) f32
    isz = x.dtype.itemsize
    Ct = int(c_tile) if c_tile is not None else _choose_c_tile(C, H, W, isz)
    assert C % Ct == 0 and (Ct == C or Ct % 8 == 0), (C, Ct)
    nC = C // Ct
    f32 = jnp.float32

    blk = Ct * H * W
    small_t = H * W + Ct * W + Ct * H
    small_f = H * W + C * W + C * H
    pad_elems = ((H + 2 * _PAD) * (W + 2 * _PAD)
                 + (C + 2 * _PAD) * (W + 2 * _PAD)
                 + (C + 2 * _PAD) * (H + 2 * _PAD))

    # ------------------ pass 1: streamed ZPool over channel blocks ------------------
    phw, pcw, phc = pl.pallas_call(
        _pool_kernel,
        out_shape=(jax.ShapeDtypeStruct((B, 2, H, W), f32),
                   jax.ShapeDtypeStruct((B, 2, C, W), f32),
                   jax.ShapeDtypeStruct((B, 2, C, H), f32)),
        grid_spec=pltpu.PrefetchScalarGridSpec(
            num_scalar_prefetch=0,
            grid=(B, nC),
            in_specs=[pl.BlockSpec((1, Ct, H, W), lambda b, c: (b, c, 0, 0))],
            out_specs=[
                pl.BlockSpec((1, 2, H, W), lambda b, c: (b, 0, 0, 0)),   # accumulated
                pl.BlockSpec((1, 2, Ct, W), lambda b, c: (b, 0, c, 0)),
                pl.BlockSpec((1, 2, Ct, H), lambda b, c: (b, 0, c, 0)),
            ]),
        compiler_params=pltpu.CompilerParams(
            dimension_semantics=("parallel", "arbitrary"),
            vmem_limit_bytes=_vmem_limit(2 * blk * isz + 3 * blk * 4
                                         + 4 * 4 * small_t)),
    )(x)

    # ------------------ pass 2: conv + BN + sigmoid on the small maps ------------------
    shw, scw, shc = pl.pallas_call(
        _gates_kernel,
        out_shape=(jax.ShapeDtypeStruct((B, H, W), f32),
                   jax.ShapeDtypeStruct((B, C, W), f32),
                   jax.ShapeDtypeStruct((B, C, H), f32)),
        grid_spec=pltpu.PrefetchScalarGridSpec(
            num_scalar_prefetch=0,
            grid=(B,),
            in_specs=[
                pl.BlockSpec((1, 2, H, W), lambda b: (b, 0, 0, 0)),
                pl.BlockSpec((1, 2, C, W), lambda b: (b, 0, 0, 0)),
                pl.BlockSpec((1, 2, C, H), lambda b: (b, 0, 0, 0)),
                pl.BlockSpec(memory_space=pltpu.MemorySpace.SMEM),   # folded conv weights
                pl.BlockSpec(memory_space=pltpu.MemorySpace.SMEM),   # folded biases
            ],
            out_specs=[
                pl.BlockSpec((1, H, W), lambda b: (b, 0, 0)),
                pl.BlockSpec((1, C, W), lambda b: (b, 0, 0)),
                pl.BlockSpec((1, C, H), lambda b: (b, 0, 0)),
            ],
            scratch_shapes=[
                pltpu.VMEM((2, H + 2 * _PAD, W + 2 * _PAD), f32),
                pltpu.VMEM((2, C + 2 * _PAD, W + 2 * _PAD), f32),
                pltpu.VMEM((2, C + 2 * _PAD, H + 2 * _PAD), f32),
            ]),
        compiler_params=pltpu.CompilerParams(
            dimension_semantics=("parallel",),
            vmem_limit_bytes=_vmem_limit(6 * 4 * small_f + 2 * 4 * pad_elems
                                         + 8 * 4 * max(H * W, C * W, C * H))),
    )(phw, pcw, phc, w_all, b_all)

    # ------------------ pass 3: finely tiled elementwise apply ------------------
    out = pl.pallas_call(
        _apply_kernel,
        out_shape=jax.ShapeDtypeStruct((B, C, H, W), x.dtype),
        grid_spec=pltpu.PrefetchScalarGridSpec(
            num_scalar_prefetch=0,
            grid=(B, nC),
            in_specs=[
                pl.BlockSpec((1, Ct, H, W), lambda b, c: (b, c, 0, 0)),
                pl.BlockSpec((1, H, W), lambda b, c: (b, 0, 0)),
                pl.BlockSpec((1, Ct, W), lambda b, c: (b, c, 0)),
                pl.BlockSpec((1, Ct, H), lambda b, c: (b, c, 0)),
            ],
            out_specs=pl.BlockSpec((1, Ct, H, W), lambda b, c: (b, c, 0, 0))),
        compiler_params=pltpu.CompilerParams(
            dimension_semantics=("parallel", "parallel"),
            vmem_limit_bytes=_vmem_limit(4 * blk * isz + 3 * blk * 4
                                         + 4 * 4 * small_t)),
    )(x, shw, scw, shc)
    return out


# ----------------------------------------------------------------------------
# Parameter construction & BN folding
# ----------------------------------------------------------------------------
def make_params(key, eps=1e-5):
    """Raw per-gate params: conv weight (1,2,7,7) OIHW and BN gamma/beta/mean/var."""
    ks = jax.random.split(key, 15)

    def gate(k0, k1, k2, k3, k4):
        w = jax.random.normal(k0, (1, 2, _K, _K), jnp.float32) * 0.1
        gamma = 1.0 + 0.1 * jax.random.normal(k1, (1,), jnp.float32)
        beta = 0.1 * jax.random.normal(k2, (1,), jnp.float32)
        mean = 0.1 * jax.random.normal(k3, (1,), jnp.float32)
        var = 1.0 + 0.1 * jax.random.uniform(k4, (1,), jnp.float32)
        return (w, gamma, beta, mean, var)

    return {"hw": gate(*ks[0:5]), "cw": gate(*ks[5:10]), "hc": gate(*ks[10:15]),
            "eps": eps}


def _fold_params(params):
    """Fold eval-mode BN into the conv weights; returns (w_all (294,), b_all (3,))."""
    eps = params["eps"]
    ws, bs = [], []
    for name in ("hw", "cw", "hc"):            # gate order used inside the kernels
        w, gamma, beta, mean, var = params[name]
        scale = gamma / jnp.sqrt(var + eps)    # (1,)
        ws.append((w[0] * scale[0]).reshape(-1))          # (2*7*7,)
        bs.append(beta - mean * scale)                     # (1,)
    return jnp.concatenate(ws), jnp.concatenate(bs)


# ----------------------------------------------------------------------------
# Pure-JAX reference (faithful port of the PyTorch TA forward)
# ----------------------------------------------------------------------------
def ta_reference(x, params):
    eps = params["eps"]

    def attention_gate(z, p):                  # z: (B, Cz, D1, D2)
        w, gamma, beta, mean, var = p
        mx = jnp.max(z, axis=1, keepdims=True)
        mn = jnp.mean(z, axis=1, keepdims=True)
        pooled = jnp.concatenate([mx, mn], axis=1)        # ZPool
        conv = lax.conv_general_dilated(
            pooled, w, window_strides=(1, 1),
            padding=[(_PAD, _PAD), (_PAD, _PAD)],
            dimension_numbers=("NCHW", "OIHW", "NCHW"))
        bn = (conv - mean) / jnp.sqrt(var + eps) * gamma + beta
        return z * jax.nn.sigmoid(bn)

    xp1 = jnp.transpose(x, (0, 2, 1, 3))
    o11 = jnp.transpose(attention_gate(xp1, params["cw"]), (0, 2, 1, 3))
    xp2 = jnp.transpose(x, (0, 3, 2, 1))
    o21 = jnp.transpose(attention_gate(xp2, params["hc"]), (0, 3, 2, 1))
    o3 = attention_gate(x, params["hw"])
    return (1.0 / 3.0) * (o3 + o11 + o21)


# ----------------------------------------------------------------------------
if __name__ == "__main__":
    key = jax.random.PRNGKey(0)
    kx, kp = jax.random.split(key)
    params = make_params(kp)

    def check(x, tag, atol, rtol, **kw):
        out = jax.block_until_ready(ta_pallas(x, params, **kw))
        ref = ta_reference(x.astype(jnp.float32), params)
        assert out.shape == x.shape and out.dtype == x.dtype, (out.shape, out.dtype)
        outf = out.astype(jnp.float32)
        if not jnp.allclose(outf, ref, atol=atol, rtol=rtol):
            max_err = float(jnp.max(jnp.abs(outf - ref)))
            raise AssertionError(f"Pallas TA mismatch [{tag}], max abs err = {max_err}")

    # Primary small NCHW shape.
    x1 = jax.random.normal(kx, (2, 4, 16, 16), jnp.float32)
    check(x1, "f32 (2,4,16,16)", 1e-4, 1e-4)

    # Non-(8,128)-aligned spatial dims + multi-C-block accumulation path.
    x2 = jax.random.normal(jax.random.fold_in(kx, 1), (1, 16, 12, 20), jnp.float32)
    check(x2, "f32 (1,16,12,20) c_tile=8", 1e-4, 1e-4, c_tile=8)

    # bf16 activations (pooling/conv in f32, apply in bf16).
    x3 = jax.random.normal(jax.random.fold_in(kx, 2), (2, 4, 16, 16),
                           jnp.float32).astype(jnp.bfloat16)
    check(x3, "bf16 (2,4,16,16)", 5e-2, 5e-2)

    print("KERNEL_OK")
</pallas_src>

<mosaic_0001>
module attributes {stable_mosaic.version = 11 : i64} {
  func.func @_pool_kernel(%arg0: i32, %arg1: i32, %arg2: memref<1x4x16x16xf32, #tpu.memory_space<vmem>>, %arg3: memref<1x2x16x16xf32, #tpu.memory_space<vmem>>, %arg4: memref<1x2x4x16xf32, #tpu.memory_space<vmem>>, %arg5: memref<1x2x4x16xf32, #tpu.memory_space<vmem>>) attributes {dimension_semantics = [#tpu.dimension_semantics<parallel>, #tpu.dimension_semantics<arbitrary>], iteration_bounds = array<i64: 2, 1>, scalar_prefetch = 0 : i64, scratch_operands = 0 : i64, tpu.core_type = #tpu.core_type<tc>, window_params = [{transform_indices = @transform_0, window_bounds = array<i64: 1, 4, 16, 16>}, {transform_indices = @transform_1, window_bounds = array<i64: 1, 2, 16, 16>}, {transform_indices = @transform_2, window_bounds = array<i64: 1, 2, 4, 16>}, {transform_indices = @transform_3, window_bounds = array<i64: 1, 2, 4, 16>}]} {
    %c0 = arith.constant 0 : index
    %c0_0 = arith.constant 0 : index
    %c0_1 = arith.constant 0 : index
    %c0_2 = arith.constant 0 : index
    %0 = vector.load %arg2[%c0, %c0_0, %c0_1, %c0_2] : memref<1x4x16x16xf32, #tpu.memory_space<vmem>>, vector<1x4x16x16xf32>
    %1 = vector.shape_cast %0 : vector<1x4x16x16xf32> to vector<4x16x16xf32>
    %cst = arith.constant dense<0xFF800000> : vector<16x16xf32>
    %2 = vector.multi_reduction <maximumf>, %1, %cst [0] : vector<4x16x16xf32> to vector<16x16xf32>
    %cst_3 = arith.constant dense<0.000000e+00> : vector<16x16xf32>
    %3 = vector.multi_reduction <add>, %1, %cst_3 [0] : vector<4x16x16xf32> to vector<16x16xf32>
    %c0_i32 = arith.constant 0 : i32
    %4 = arith.cmpi eq, %arg1, %c0_i32 : i32
    %5 = arith.extui %4 : i1 to i32
    %c0_i32_4 = arith.constant 0 : i32
    %6 = arith.cmpi ne, %5, %c0_i32_4 : i32
    scf.if %6 {
      %c0_28 = arith.constant 0 : index
      %c0_29 = arith.constant 0 : index
      %c0_30 = arith.constant 0 : index
      %c0_31 = arith.constant 0 : index
      %30 = vector.load %arg3[%c0_28, %c0_29, %c0_30, %c0_31] : memref<1x2x16x16xf32, #tpu.memory_space<vmem>>, vector<1x1x16x16xf32>
      %31 = vector.shape_cast %30 : vector<1x1x16x16xf32> to vector<16x16xf32>
      %32 = vector.shape_cast %2 : vector<16x16xf32> to vector<1x1x16x16xf32>
      tpu.vector_store %arg3[%c0_28, %c0_29, %c0_30, %c0_31], %32 {strides = array<i32>} : memref<1x2x16x16xf32, #tpu.memory_space<vmem>>, vector<1x1x16x16xf32>,
      %c0_32 = arith.constant 0 : index
      %c1_33 = arith.constant 1 : index
      %c0_34 = arith.constant 0 : index
      %c0_35 = arith.constant 0 : index
      %33 = vector.load %arg3[%c0_32, %c1_33, %c0_34, %c0_35] : memref<1x2x16x16xf32, #tpu.memory_space<vmem>>, vector<1x1x16x16xf32>
      %34 = vector.shape_cast %33 : vector<1x1x16x16xf32> to vector<16x16xf32>
      %35 = vector.shape_cast %3 : vector<16x16xf32> to vector<1x1x16x16xf32>
      tpu.vector_store %arg3[%c0_32, %c1_33, %c0_34, %c0_35], %35 {strides = array<i32>} : memref<1x2x16x16xf32, #tpu.memory_space<vmem>>, vector<1x1x16x16xf32>,
    } else {
    }
    %c0_i32_5 = arith.constant 0 : i32
    %7 = arith.cmpi sgt, %arg1, %c0_i32_5 : i32
    %8 = arith.extui %7 : i1 to i32
    %c0_i32_6 = arith.constant 0 : i32
    %9 = arith.cmpi ne, %8, %c0_i32_6 : i32
    scf.if %9 {
      %c0_28 = arith.constant 0 : index
      %c0_29 = arith.constant 0 : index
      %c0_30 = arith.constant 0 : index
      %c0_31 = arith.constant 0 : index
      %30 = vector.load %arg3[%c0_28, %c0_29, %c0_30, %c0_31] : memref<1x2x16x16xf32, #tpu.memory_space<vmem>>, vector<1x1x16x16xf32>
      %31 = vector.shape_cast %30 : vector<1x1x16x16xf32> to vector<16x16xf32>
      %32 = arith.maximumf %31, %2 : vector<16x16xf32>
      %c0_32 = arith.constant 0 : index
      %c0_33 = arith.constant 0 : index
      %c0_34 = arith.constant 0 : index
      %c0_35 = arith.constant 0 : index
      %33 = vector.load %arg3[%c0_32, %c0_33, %c0_34, %c0_35] : memref<1x2x16x16xf32, #tpu.memory_space<vmem>>, vector<1x1x16x16xf32>
      %34 = vector.shape_cast %33 : vector<1x1x16x16xf32> to vector<16x16xf32>
      %35 = vector.shape_cast %32 : vector<16x16xf32> to vector<1x1x16x16xf32>
      tpu.vector_store %arg3[%c0_32, %c0_33, %c0_34, %c0_35], %35 {strides = array<i32>} : memref<1x2x16x16xf32, #tpu.memory_space<vmem>>, vector<1x1x16x16xf32>,
      %c0_36 = arith.constant 0 : index
      %c1_37 = arith.constant 1 : index
      %c0_38 = arith.constant 0 : index
      %c0_39 = arith.constant 0 : index
      %36 = vector.load %arg3[%c0_36, %c1_37, %c0_38, %c0_39] : memref<1x2x16x16xf32, #tpu.memory_space<vmem>>, vector<1x1x16x16xf32>
      %37 = vector.shape_cast %36 : vector<1x1x16x16xf32> to vector<16x16xf32>
      %38 = arith.addf %37, %3 : vector<16x16xf32>
      %c0_40 = arith.constant 0 : index
      %c1_41 = arith.constant 1 : index
      %c0_42 = arith.constant 0 : index
      %c0_43 = arith.constant 0 : index
      %39 = vector.load %arg3[%c0_40, %c1_41, %c0_42, %c0_43] : memref<1x2x16x16xf32, #tpu.memory_space<vmem>>, vector<1x1x16x16xf32>
      %40 = vector.shape_cast %39 : vector<1x1x16x16xf32> to vector<16x16xf32>
      %41 = vector.shape_cast %38 : vector<16x16xf32> to vector<1x1x16x16xf32>
      tpu.vector_store %arg3[%c0_40, %c1_41, %c0_42, %c0_43], %41 {strides = array<i32>} : memref<1x2x16x16xf32, #tpu.memory_space<vmem>>, vector<1x1x16x16xf32>,
    } else {
    }
    %cst_7 = arith.constant dense<0xFF800000> : vector<4x16xf32>
    %10 = vector.multi_reduction <maximumf>, %1, %cst_7 [1] : vector<4x16x16xf32> to vector<4x16xf32>
    %c0_8 = arith.constant 0 : index
    %c0_9 = arith.constant 0 : index
    %c0_10 = arith.constant 0 : index
    %c0_11 = arith.constant 0 : index
    %11 = vector.load %arg4[%c0_8, %c0_9, %c0_10, %c0_11] : memref<1x2x4x16xf32, #tpu.memory_space<vmem>>, vector<1x1x4x16xf32>
    %12 = vector.shape_cast %11 : vector<1x1x4x16xf32> to vector<4x16xf32>
    %13 = vector.shape_cast %10 : vector<4x16xf32> to vector<1x1x4x16xf32>
    tpu.vector_store %arg4[%c0_8, %c0_9, %c0_10, %c0_11], %13 {strides = array<i32>} : memref<1x2x4x16xf32, #tpu.memory_space<vmem>>, vector<1x1x4x16xf32>,
    %cst_12 = arith.constant 6.250000e-02 : f32
    %14 = vector.broadcast %cst_12 : f32 to vector<4x1x16xf32>
    "tpu.trace_start"() <{level = 10 : i32, message = "cmh,chw->cmw"}> : () -> ()
    %cst_13 = arith.constant dense<0.000000e+00> : vector<4x1x16xf32>
    %15 = tpu.matmul %14, %1, %cst_13 {dimension_numbers = #tpu.dot_dimension_numbers<[2], [1], [1], [2], [0, 0, 0, 1, 1, 2], [0], [0]>} : vector<4x1x16xf32>, vector<4x16x16xf32>, vector<4x1x16xf32> -> vector<4x1x16xf32>
    "tpu.trace_stop"() : () -> ()
    %16 = vector.shape_cast %15 : vector<4x1x16xf32> to vector<4x16xf32>
    %c0_14 = arith.constant 0 : index
    %c1 = arith.constant 1 : index
    %c0_15 = arith.constant 0 : index
    %c0_16 = arith.constant 0 : index
    %17 = vector.load %arg4[%c0_14, %c1, %c0_15, %c0_16] : memref<1x2x4x16xf32, #tpu.memory_space<vmem>>, vector<1x1x4x16xf32>
    %18 = vector.shape_cast %17 : vector<1x1x4x16xf32> to vector<4x16xf32>
    %19 = vector.shape_cast %16 : vector<4x16xf32> to vector<1x1x4x16xf32>
    tpu.vector_store %arg4[%c0_14, %c1, %c0_15, %c0_16], %19 {strides = array<i32>} : memref<1x2x4x16xf32, #tpu.memory_space<vmem>>, vector<1x1x4x16xf32>,
    %cst_17 = arith.constant dense<0xFF800000> : vector<4x16xf32>
    %20 = vector.multi_reduction <maximumf>, %1, %cst_17 [2] : vector<4x16x16xf32> to vector<4x16xf32>
    %c0_18 = arith.constant 0 : index
    %c0_19 = arith.constant 0 : index
    %c0_20 = arith.constant 0 : index
    %c0_21 = arith.constant 0 : index
    %21 = vector.load %arg5[%c0_18, %c0_19, %c0_20, %c0_21] : memref<1x2x4x16xf32, #tpu.memory_space<vmem>>, vector<1x1x4x16xf32>
    %22 = vector.shape_cast %21 : vector<1x1x4x16xf32> to vector<4x16xf32>
    %23 = vector.shape_cast %20 : vector<4x16xf32> to vector<1x1x4x16xf32>
    tpu.vector_store %arg5[%c0_18, %c0_19, %c0_20, %c0_21], %23 {strides = array<i32>} : memref<1x2x4x16xf32, #tpu.memory_space<vmem>>, vector<1x1x4x16xf32>,
    %cst_22 = arith.constant 6.250000e-02 : f32
    %24 = vector.broadcast %cst_22 : f32 to vector<4x16x1xf32>
    "tpu.trace_start"() <{level = 10 : i32, message = "chw,cwn->chn"}> : () -> ()
    %cst_23 = arith.constant dense<0.000000e+00> : vector<4x16x1xf32>
    %25 = tpu.matmul %1, %24, %cst_23 {dimension_numbers = #tpu.dot_dimension_numbers<[2], [1], [1], [2], [0, 0, 0, 1, 1, 2], [0], [0]>} : vector<4x16x16xf32>, vector<4x16x1xf32>, vector<4x16x1xf32> -> vector<4x16x1xf32>
    "tpu.trace_stop"() : () -> ()
    %26 = vector.shape_cast %25 : vector<4x16x1xf32> to vector<4x16xf32>
    %c0_24 = arith.constant 0 : index
    %c1_25 = arith.constant 1 : index
    %c0_26 = arith.constant 0 : index
    %c0_27 = arith.constant 0 : index
    %27 = vector.load %arg5[%c0_24, %c1_25, %c0_26, %c0_27] : memref<1x2x4x16xf32, #tpu.memory_space<vmem>>, vector<1x1x4x16xf32>
    %28 = vector.shape_cast %27 : vector<1x1x4x16xf32> to vector<4x16xf32>
    %29 = vector.shape_cast %26 : vector<4x16xf32> to vector<1x1x4x16xf32>
    tpu.vector_store %arg5[%c0_24, %c1_25, %c0_26, %c0_27], %29 {strides = array<i32>} : memref<1x2x4x16xf32, #tpu.memory_space<vmem>>, vector<1x1x4x16xf32>,
    return
  }
  func.func @transform_0(%arg0: i32, %arg1: i32) -> (i32, i32, i32, i32) {
    %c0_i32 = arith.constant 0 : i32
    %c0_i32_0 = arith.constant 0 : i32
    %c0_i32_1 = arith.constant 0 : i32
    return %arg0, %arg1, %c0_i32, %c0_i32_0 : i32, i32, i32, i32
  }
  func.func @transform_1(%arg0: i32, %arg1: i32) -> (i32, i32, i32, i32) {
    %c0_i32 = arith.constant 0 : i32
    %c0_i32_0 = arith.constant 0 : i32
    %c0_i32_1 = arith.constant 0 : i32
    %c0_i32_2 = arith.constant 0 : i32
    return %arg0, %c0_i32, %c0_i32_0, %c0_i32_1 : i32, i32, i32, i32
  }
  func.func @transform_2(%arg0: i32, %arg1: i32) -> (i32, i32, i32, i32) {
    %c0_i32 = arith.constant 0 : i32
    %c0_i32_0 = arith.constant 0 : i32
    %c0_i32_1 = arith.constant 0 : i32
    return %arg0, %c0_i32, %arg1, %c0_i32_0 : i32, i32, i32, i32
  }
  func.func @transform_3(%arg0: i32, %arg1: i32) -> (i32, i32, i32, i32) {
    %c0_i32 = arith.constant 0 : i32
    %c0_i32_0 = arith.constant 0 : i32
    %c0_i32_1 = arith.constant 0 : i32
    return %arg0, %c0_i32, %arg1, %c0_i32_0 : i32, i32, i32, i32
  }
}

</mosaic_0001>

<bundles_post_ra>
// kernel: tpu_custom_call.1
= control target key start
LH: loop header
LB: loop body
LE: loop exit
PB: predicated region body
PF: predicated region fallthrough
CT: control target
= control target key end

     0   :  { %9 = vsyncpa [#allocation3], 0  ;;  %s2107_s0 = inlined_call_operand.hbm [shape: f32[2,4,16,16], index: 0, kind: input, shape index: {}]   ;;  %s2108_s1 = inlined_call_operand.hbm [shape: f32[2,2,16,16], index: 1, kind: output, shape index: {0}]   ;;  %s2109_s2 = inlined_call_operand.hbm [shape: f32[2,2,4,16], index: 2, kind: output, shape index: {1}]   ;;  %s2110_s3 = inlined_call_operand.hbm [shape: f32[2,2,4,16], index: 3, kind: output, shape index: {2}]  }
   0x1   :  { %11 = vsyncpa [#allocation3 + $0x1], 0 }
   0x2   :  { %12 = vsyncpa [#allocation4], 0 }
   0x3   :  { %14 = vsyncpa [#allocation4 + $0x1], 0 }
   0x4   :  { %15 = vsyncpa [#allocation7], 0 }
   0x5   :  { %17 = vsyncpa [#allocation7 + $0x1], 0  ;;  %s1718_s12 = smov 0   ;;  %s1720_s13 = smov 0  }
   0x6   :  { %s1722_s14 = smov 0   ;;  %s1724_s15 = smov 0  }
   0x7   :  { %s1726_s16 = smov 0   ;;  %s1728_s17 = smov 0  }
   0x8 LB: > { %s1749_s18 = sadd.s32 4294967295, %s1682_s17   ;;  %s2111_s19 = sadd.s32 4294967294, %s1682_s17   ;;  %s1682_s17 = sphi %s1728_s17, %s23_s17   ;;  %s1678_s16 = sphi %s1726_s16, %s2125_s16   ;;  %s1674_s15 = sphi %s1724_s15, %s2124_s15   ;;  %s1670_s14 = sphi %s1722_s14, %s2123_s14   ;;  %s1666_s13 = sphi %s1720_s13, %s2122_s13   ;;  %s1662_s12 = sphi %s1718_s12, %s2121_s12  }
   0x9   : > { %s35_s20 = sadd.s32 1, %s1678_s16  ;;  %s44_s21 = sadd.s32 1, %s1670_s14 }
   0xa   : > { %p37_p0 = scmp.ge.s32.totalorder %s35_s20, 2  ;;  %p51_p1 = scmp.ne.s32.totalorder %s1670_s14, %s1666_s13 }
   0xb   : > { %p52_p2 = scmp.eq.s32.totalorder %s1682_s17, 0  ;;  %p57_p3 = scmp.ne.s32.totalorder %s1666_s13, %s1662_s12 }
   0xc   : > { %s2127_s20 = smov (%p37_p0, %s35_s20), 0  ;;  %p58_p5 = scmp.eq.s32.totalorder %s1749_s18, 0 }
   0xd   : > { %p1761_p4 = por %p52_p2, %p51_p1  ;;  %s39_s23 = ssub.s32 %s1678_s16, %s2127_s20 }
   0xe   : > { %p81_p6 = scmp.eq.s32.totalorder %s1749_s18, 1  ;;  %p42_p7 = scmp.eq.s32.totalorder %s39_s23, 0 }
   0xf   : > { %p1769_p8 = por %p58_p5, %p57_p3  ;;  %p87_p10 = scmp.eq.s32.totalorder %s2111_s19, 1 }
  0x10   : > { %p1773_p9 = por %p81_p6, %p51_p1  ;;  %p1456_p13 = scmp.lt.s32.totalorder %s1682_s17, 2 }
  0x11   : > { %s1780_s26 = scalar_select %p42_p7, %s1670_s14, %s44_s21  }
  0x12   : > { %p1782_p11 = por %p87_p10, %p57_p3  ;;  %s163_s28 = sand.u32 1, %s1670_s14  }
  0x13   : > { %s1307_s29 = sshll.u32 %s163_s28, 6  ;;  %s1346_s30 = sshll.u32 %s1678_s16, 10 }
  0x14   : > { %s176_s6 = scalar_lea.hbm %s2107_s0, %s1346_s30  ;;  %s167_s7 = scalar_lea.vmem [#allocation2], %s1307_s29 }
  0x15   : > { %s177_s8 = sshll.u32 %s167_s7, 4  ;;  %p1795_p0 = pnand %p1456_p13, %p1761_p4  ;;  %s178_s8 = int_to_ptr.vmem [resolvable:$true] %s177_s8 }
  0x16   : > { %p1310_p1 = scmp.ge.s32.totalorder %s1682_s17, 1  ;;  %s164_s10 = scalar_lea.sflag [#allocation3], %s163_s28 }
  0x17   : > { %p1520_p2 = pneg %p1795_p0  ;;  %s1531_s11 = scalar_lea.vmem %s178_s8, 1024 }
  0x18   : > { %p1532_p3 = scmp.ne.s32.totalorder %s178_s8, %s1531_s11  ;;  %s1684_s21 = smov [#allocation2]  }
  0x19   : > { %s1536_s23 = sshll.u32 %s1684_s21, 4  ;;  %s1537_s23 = int_to_ptr.vmem [resolvable:$false] %s1536_s23 }
  0x1a   : > { %p1534_p5 = pnand %p1532_p3, %p1520_p2  ;;  %s1538_s29 = scalar_lea.vmem %s1537_s23, 2048 }
  0x1b   : > { %p1539_p7 = scmp.lt.s32.totalorder %s178_s8, %s1537_s23  ;;  %p1540_p10 = scmp.lt.s32.totalorder %s1538_s29, %s1531_s11 }
  0x1c   : > { %p1535_p6 = pneg %p1534_p5 }
  0x1d   : > { %p1541_p12 = por %p1540_p10, %p1539_p7 }
  0x1f   : > { %p1542_p4 = pnand %p1541_p12, %p1535_p6 }
  0x21   : > { %1545 = shalt.err (!%p1542_p4)
}
  0x22   : > { %s1685_s22 = smov 128   ;;  %s1686_s28 = smov 8  }
  0x23   : > { %1445 = dma.hbm_to_vmem [thread:$0]  (!%p1795_p0), %s176_s6, 1024, %s178_s8, %s164_s10, %s1685_s22, %s1685_s22, %s1686_s28  }
  0x24   : > { %p185_p13 = scmp.lt.s32.totalorder %s1682_s17, 3 }
  0x26   : > { %p186_p2 = pnand %p1310_p1, %p185_p13 }
  0x27   : > { %s1808_s30 = sand.u32 (!%p186_p2), 1, %s1666_s13  }
  0x28   : > { %189 = sbr.rel (%p186_p2) target bundleno = 421 (0x1a5), region = 24  ;;  %s1311_s4 = sshll.u32 (!%p186_p2), %s1808_s30, 6 }
  0x29   : > { %s192_s5 = scalar_lea.sflag (!%p186_p2), [#allocation3], %s1808_s30  ;;  %s1812_s7 = scalar_lea.vmem (!%p186_p2), [#allocation2], %s1311_s4 }
  0x2d   : > { %1649 = dma.done.wait (%p1769_p8), %s192_s5, 1024  }
  0x2e   : > { %1651 = vsyncadd (%p1769_p8), %s192_s5, 4294966272  ;;  %v1687_v0 = vmov 0.0   ;;  %vm1688_vm0 = vmmov 0   ;;  %v1825_v1 = vld [vmem:[%s1812_s7 + $0x8] sm:$0xff]  ;;  %vm237_vm1 = vcmask 130048   ;;  %v1828_v2 = vld [vmem:[%s1812_s7 + $0x18] sm:$0xff] }
  0x2f   : > { %1378 = vmatprep.subr.mxu0 %v1687_v0  ;;  %1385 = vmatprep.subr.mxu1 %v1687_v0  ;;  %v229_v3 = vld [vmem:[%s1812_s7] sm:$0xff]  ;;  %v259_v4 = vsel %vm237_vm1, %v1825_v1, 0.0  ;;  %v260_v5 = vsel %vm237_vm1, %v1828_v2, 0.0  ;;  %v1839_v7 = vld [vmem:[%s1812_s7 + $0x10] sm:$0xff]  ;;  %v1842_v8 = vld [vmem:[%s1812_s7 + $0x28] sm:$0xff]  ;;  %s1312_s24 = sshll.u32 %s1808_s30, 5 }
  0x30   : > { %1382 = vmatprep.mubr.msk.f32.mxu0 %vm1688_vm0, %v1687_v0  ;;  %1389 = vmatprep.mubr.msk.f32.mxu1 %vm1688_vm0, %v1687_v0  ;;  %v252_v6 = vsel %vm237_vm1, %v229_v3, 0.0  ;;  %v261_v9 = vadd.f32 %v260_v5, %v259_v4  ;;  %v253_v10 = vsel %vm237_vm1, %v1839_v7, 0.0  ;;  %v262_v11 = vsel %vm237_vm1, %v1842_v8, 0.0  ;;  %v1852_v12 = vld [vmem:[%s1812_s7 + $0x38] sm:$0xff]  ;;  %v233_v13 = vld [vmem:[%s1812_s7 + $0x20] sm:$0xff]  ;;  %v235_v17 = vld [vmem:[%s1812_s7 + $0x30] sm:$0xff] }
  0x31   : > { %1379 = vmatpush3.msra.mxu0 %v1825_v1  ;;  %1386 = vmatpush3.msra.mxu1 %v1828_v2  ;;  %v254_v14 = vadd.f32 %v253_v10, %v252_v6  ;;  %v264_v15 = vsel %vm237_vm1, %v1852_v12, 0.0  ;;  %v255_v16 = vsel %vm237_vm1, %v233_v13, 0.0  ;;  %v1689_v18 = vmov 0.0625   ;;  %s1886_s6 = scalar_lea.vmem [#allocation5], %s1312_s24  ;;  %s1313_s8 = sshll.u32 %s1808_s30, 3 }
  0x32   : > { %1380 = vmatprep.subr.mxu0 %v1687_v0  ;;  %1387 = vmatprep.subr.mxu1 %v1687_v0  ;;  %v263_v19 = vadd.f32 %v262_v11, %v261_v9  ;;  %v257_v20 = vsel %vm237_vm1, %v235_v17, 0.0  ;;  %v1867_v22 = vsel %vm237_vm1, %v1825_v1, -inf  ;;  %v1871_v23 = vsel %vm237_vm1, %v1842_v8, -inf  ;;  %s1927_s9 = scalar_lea.vmem [#allocation6], %s1313_s8  ;;  %s1952_s10 = scalar_lea.vmem [#allocation8], %s1313_s8 }
  0x33   : > { %1381 = vmatpush3.msra.mxu0 %v229_v3  ;;  %1388 = vmatpush3.msra.mxu1 %v1839_v7  ;;  %v256_v21 = vadd.f32 %v255_v16, %v254_v14  ;;  %v238_v25 = vsel %vm237_vm1, %v229_v3, -inf  ;;  %v248_v26 = vmax.f32 %v1867_v22, %v1871_v23  ;;  %v246_v28 = vsel %vm237_vm1, %v1828_v2, -inf  ;;  %s1137_s11 = sshll.u32 %s1927_s9, 4  ;;  %s1101_s21 = sand.u32 1, %s1749_s18   ;;  %s1971_s11 = int_to_ptr.vmem [resolvable:$true] %s1137_s11 }
  0x34   : > { %1383 = vmatmul.mubr.msk.f32.vlgmr.msra.gmra.mxu0 %vm237_vm1, %v1689_v18  ;;  %1390 = vmatmul.mubr.msk.f32.vlgmr.msra.gmra.mxu1 %vm237_vm1, %v1689_v18  ;;  %v265_v24 = vadd.f32 %v264_v15, %v263_v19  ;;  %v240_v29 = vsel %vm237_vm1, %v233_v13, -inf  ;;  %v249_v30 = vsel %vm237_vm1, %v1852_v12, -inf  ;;  %v239_v31 = vsel %vm237_vm1, %v1839_v7, -inf  ;;  %s1348_s23 = sshll.u32 %s1674_s15, 7  ;;  %s1973_s4 = scalar_lea.sflag [#allocation7], %s1101_s21 }
  0x35   : > { %1392 = vmatprep.subr.mxu0 %v1687_v0  ;;  %1399 = vmatprep.subr.mxu1 %v1687_v0  ;;  %v258_v27 = vadd.f32 %v257_v20, %v256_v21  ;;  %v241_v32 = vmax.f32 %v238_v25, %v240_v29  ;;  %v250_v33 = vmax.f32 %v246_v28, %v249_v30  ;;  %v242_v34 = vsel %vm237_vm1, %v235_v17, -inf  ;;  %s1969_s28 = scalar_lea.hbm %s2109_s2, %s1348_s23  ;;  %s1546_s5 = scalar_lea.vmem %s1971_s11, 128 }
  0x36   : > { %1393 = vmatpush3.msra.mxu0 %v1842_v8  ;;  %1400 = vmatpush3.msra.mxu1 %v1852_v12  ;;  %1316 = vst.msk [vmem:[%s1886_s6 + $0x18] sm:$0xff] %vm237_vm1, %v265_v24  ;;  %v243_v35 = vmax.f32 %v239_v31, %v242_v34  ;;  %v299_v38 = vmax.f32 %v239_v31, %v246_v28  ;;  %vm324_vm2 = vcmask 1041409   ;;  %vm326_vm3 = vcmask 1042434   ;;  %p1547_p8 = scmp.ne.s32.totalorder %s1971_s11, %s1546_s5  ;;  %s1691_s18 = smov [#allocation6]  }
  0x37   : > { %1394 = vmatprep.subr.mxu0 %v1687_v0  ;;  %1396 = vmatprep.mubr.msk.f32.mxu0 %vm1688_vm0, %v1687_v0  ;;  %1315 = vst.msk [vmem:[%s1886_s6 + $0x10] sm:$0xff] %vm237_vm1, %v258_v27  ;;  %v251_v36 = vmax.f32 %v248_v26, %v250_v33  ;;  %v292_v39 = vmax.f32 %v238_v25, %v1867_v22  ;;  %vm328_vm4 = vcmask 1043459   ;;  %vm331_vm5 = vcmask 125952   ;;  %s1550_s7 = sshll.u32 %s1691_s18, 4  ;;  %s1551_s7 = int_to_ptr.vmem [resolvable:$false] %s1550_s7 }
  0x38   : > { %1395 = vmatpush3.msra.mxu0 %v233_v13  ;;  %1401 = vmatprep.subr.mxu1 %v1687_v0  ;;  %v244_v37 = vmax.f32 %v241_v32, %v243_v35  ;;  %v306_v40 = vmax.f32 %v240_v29, %v1871_v23  ;;  %v300_v41 = vrot.slane %v299_v38, 4  ;;  %v313_v43 = vmax.f32 %v242_v34, %v249_v30  ;;  %p1548_p12 = pnand %p1547_p8, %p1773_p9  ;;  %s1552_s24 = scalar_lea.vmem %s1551_s7, 256 }
  0x39   : > { %1397 = vmatmul.mubr.msk.f32.vlgmr.msra.gmra.mxu0 %vm237_vm1, %v1689_v18  ;;  %1402 = vmatpush3.msra.mxu1 %v235_v17  ;;  %271 = vst.msk [vmem:[%s1886_s6 + $0x8] sm:$0xff] %vm237_vm1, %v251_v36  ;;  %v293_v42 = vrot.slane %v292_v39, 4  ;;  %v1690_v5 = vmov 0   ;;  %v653_v6 = vlaneseq  ;;  %vm664_vm6 = vcmask 130112   ;;  %p1553_p1 = scmp.lt.s32.totalorder %s1971_s11, %s1551_s7  ;;  %p1554_p3 = scmp.lt.s32.totalorder %s1552_s24, %s1546_s5 }
  0x3a   : > { %1403 = vmatprep.mubr.msk.f32.mxu1 %vm1688_vm0, %v1687_v0  ;;  %1406 = vmatprep.subr.mxu0 %v1689_v18  ;;  %270 = vst.msk [vmem:[%s1886_s6] sm:$0xff] %vm237_vm1, %v244_v37  ;;  %v307_v44 = vrot.slane %v306_v40, 4  ;;  %v301_v45 = vmax.f32 %v299_v38, %v300_v41  ;;  %v314_v47 = vrot.slane %v313_v43, 4  ;;  %p1549_p0 = pneg %p1548_p12 }
  0x3b   : > { %1404 = vmatmul.mubr.msk.f32.vlgmr.msra.gmra.mxu1 %vm237_vm1, %v1689_v18  ;;  %1407 = vmatpush3.msra.mxu0 %v1689_v18  ;;  %v294_v46 = vmax.f32 %v292_v39, %v293_v42  ;;  %p1555_p5 = por %p1554_p3, %p1553_p1 }
  0x3c   : > { %1408 = vmatprep.subr.mxu0 %v1689_v18  ;;  %1410 = vmatprep.mubr.msk.f32.mxu0 %vm237_vm1, %v229_v3  ;;  %v308_v48 = vmax.f32 %v306_v40, %v307_v44  ;;  %v302_v49 = vrot.slane %v301_v45, 2  ;;  %v315_v51 = vmax.f32 %v313_v43, %v314_v47 }
  0x3d   : > { %1409 = vmatpush3.msra.mxu0 %v1689_v18  ;;  %1413 = vmatprep.subr.mxu1 %v1689_v18  ;;  %v295_v50 = vrot.slane %v294_v46, 2  ;;  %p1556_p6 = pnand %p1555_p5, %p1549_p0 }
  0x3e   : > { %1411 = vmatmul.mubr.msk.f32.vlgmr.msra.gmra.mxu0 %vm237_vm1, %v1825_v1  ;;  %1414 = vmatpush3.msra.mxu1 %v1689_v18  ;;  %v309_v52 = vrot.slane %v308_v48, 2  ;;  %v303_v53 = vmax.f32 %v301_v45, %v302_v49  ;;  %v316_v55 = vrot.slane %v315_v51, 2 }
  0x3f   : > { %1415 = vmatprep.subr.mxu1 %v1689_v18  ;;  %1417 = vmatprep.mubr.msk.f32.mxu1 %vm237_vm1, %v1839_v7  ;;  %v296_v54 = vmax.f32 %v294_v46, %v295_v50  ;;  %v654_v7 = vand.u32 127, %v653_v6 }
  0x40   : > { %1416 = vmatpush3.msra.mxu1 %v1689_v18  ;;  %1420 = vmatprep.subr.mxu0 %v1689_v18  ;;  %v310_v56 = vmax.f32 %v308_v48, %v309_v52  ;;  %v304_v57 = vrot.slane %v303_v53, 1  ;;  %v317_v59 = vmax.f32 %v315_v51, %v316_v55 }
  0x41   : > { %1418 = vmatmul.mubr.msk.f32.vlgmr.msra.gmra.mxu1 %vm237_vm1, %v1828_v2  ;;  %1421 = vmatpush3.msra.mxu0 %v1689_v18  ;;  %v297_v58 = vrot.slane %v296_v54, 1  ;;  %v659_v9 = vadd.s32 4294967288, %v654_v7 }
  0x42   : > { %1422 = vmatprep.subr.mxu0 %v1689_v18  ;;  %1424 = vmatprep.mubr.msk.f32.mxu0 %vm237_vm1, %v233_v13  ;;  %v311_v60 = vrot.slane %v310_v56, 1  ;;  %v305_v61 = vmax.f32 %v303_v53, %v304_v57  ;;  %v318_v63 = vrot.slane %v317_v59, 1 }
  0x43   : > { %1423 = vmatpush3.msra.mxu0 %v1689_v18  ;;  %1427 = vmatprep.subr.mxu1 %v1689_v18  ;;  %v298_v62 = vmax.f32 %v296_v54, %v297_v58 }
  0x44   : > { %1425 = vmatmul.mubr.msk.f32.vlgmr.msra.gmra.mxu0 %vm237_vm1, %v1842_v8  ;;  %1428 = vmatpush3.msra.mxu1 %v1689_v18  ;;  %v312_v0 = vmax.f32 %v310_v56, %v311_v60  ;;  %v319_v2 = vmax.f32 %v317_v59, %v318_v63  ;;  %v656_v8 = vshrl.u32 %v653_v6, 7 }
  0x45   : > { %1429 = vmatprep.subr.mxu1 %v1689_v18  ;;  %1431 = vmatprep.mubr.msk.f32.mxu1 %vm237_vm1, %v235_v17  ;;  %v325_v1 = vsel %vm324_vm2, %v305_v61, %v298_v62 }
  0x46   : > { %1430 = vmatpush3.msra.mxu1 %v1689_v18  ;;  %633 = vmax.xlane.f32.xlu1 %v239_v31  ;;  %v327_v3 = vsel %vm326_vm3, %v312_v0, %v325_v1  ;;  %v1931_v10 = vsub.s32 %v654_v7, %v656_v8  ;;  %v1933_v13 = vsub.s32 %v659_v9, %v656_v8 }
  0x47   : > { %1432 = vmatmul.mubr.msk.f32.vlgmr.msra.gmra.mxu1 %vm237_vm1, %v1852_v12  ;;  %629 = vmax.xlane.f32.xlu0 %v238_v25  ;;  %v329_v4 = vsel %vm328_vm4, %v319_v2, %v327_v3 }
  0x48   : > { %332 = vst.msk [vmem:[%s1927_s9] sm:$0xf] %vm331_vm5, %v329_v4  ;;  %1517 = vset.pattern.permute.xlu1 %v1690_v5  ;;  %1516 = vset.pattern.permute.xlu0 %v1690_v5 }
  0x4a   : > { %635 = vmax.xlane.f32.xlu1 %v246_v28 }
  0x4b   : > { %631 = vmax.xlane.f32.xlu0 %v1867_v22 }
  0x4e   : > { %639 = vmax.xlane.f32.xlu1 %v1871_v23 }
  0x4f   : > { %637 = vmax.xlane.f32.xlu0 %v240_v29 }
  0x52   : > { %643 = vmax.xlane.f32.xlu1 %v249_v30 }
  0x53   : > { %641 = vmax.xlane.f32.xlu0 %v242_v34 }
  0xcf   : > { %v634_v11 = vpop.xlane.xlu1 %633 }
  0xd0   : > { %v630_v12 = vpop.xlane.xlu0 %629  ;;  %v669_v14 = vrot.slane %v634_v11, %v1931_v10 }
  0xd1   : > { %v658_v15 = vrot.slane %v630_v12, %v1931_v10 }
  0xd3   : > { %v636_v16 = vpop.xlane.xlu1 %635 }
  0xd4   : > { %v673_v17 = vrot.slane %v636_v16, %v1933_v13  ;;  %v632_v18 = vpop.xlane.xlu0 %631 }
  0xd5   : > { %v663_v19 = vrot.slane %v632_v18, %v1933_v13 }
  0xd6   : > { %v674_v20 = vsel %vm664_vm6, %v673_v17, %v669_v14 }
  0xd7   : > { %v665_v21 = vsel %vm664_vm6, %v663_v19, %v658_v15  ;;  %v640_v22 = vpop.xlane.xlu1 %639 }
  0xd8   : > { %v682_v23 = vrot.slane %v640_v22, %v1933_v13  ;;  %v638_v24 = vpop.xlane.xlu0 %637  ;;  %v693_v26 = vsel %vm324_vm2, %v674_v20, %v665_v21 }
  0xd9   : > { %v678_v25 = vrot.slane %v638_v24, %v1931_v10 }
  0xdb   : > { %v683_v27 = vsel %vm664_vm6, %v682_v23, %v678_v25  ;;  %v644_v28 = vpop.xlane.xlu1 %643 }
  0xdc   : > { %v691_v29 = vrot.slane %v644_v28, %v1933_v13  ;;  %v642_v30 = vpop.xlane.xlu0 %641  ;;  %v694_v31 = vsel %vm326_vm3, %v683_v27, %v693_v26 }
  0xdd   : > { %v687_v32 = vrot.slane %v642_v30, %v1931_v10 }
  0xdf   : > { %v692_v33 = vsel %vm664_vm6, %v691_v29, %v687_v32 }
  0xe0   : > { %v695_v34 = vsel %vm328_vm4, %v692_v33, %v694_v31 }
  0xe1   : > { %697 = vst.msk [vmem:[%s1952_s10] sm:$0xf] %vm331_vm5, %v695_v34 }
  0xf4   : > { %v402_v35 = vpop.f32.mrf.mxu0  ;;  %v472_v36 = vpop.f32.mrf.mxu1 }
  0xf5   : > { %v620_v39 = vrot.slane %v472_v36, 7 }
  0xf6   : > { %v1384_v37 = vpop.f32.mrf.mxu0  ;;  %v1391_v38 = vpop.f32.mrf.mxu1 }
  0xf7   : > { %v621_v42 = vsel %vm324_vm2, %v620_v39, %v402_v35 }
  0xf9   : > { %v542_v40 = vpop.f32.mrf.mxu0 }
  0xfa   : > { %v622_v41 = vrot.slane %v542_v40, 6 }
  0xfb   : > { %v612_v43 = vpop.f32.mrf.mxu1  ;;  %v1398_v44 = vpop.f32.mrf.mxu0 }
  0xfc   : > { %v623_v45 = vsel %vm326_vm3, %v622_v41, %v621_v42  ;;  %v624_v46 = vrot.slane %v612_v43, 5 }
  0xfd   : > { %v1405_v47 = vpop.f32.mrf.mxu1 }
  0xfe   : > { %v625_v48 = vsel %vm328_vm4, %v624_v46, %v623_v45  ;;  %v1412_v49 = vpop.f32.mrf.mxu0 }
  0xff   : > { %1325 = vst.msk [vmem:[%s1927_s9 + $0x4] sm:$0xf] %vm331_vm5, %v625_v48  ;;  %1034 = vperm.xlu1 %1517, %v1412_v49  }
 0x100   : > { %v770_v50 = vpop.f32.mrf.mxu0 }
 0x101   : > { %1031 = vperm.xlu0 %1516, %v770_v50   ;;  %v1419_v51 = vpop.f32.mrf.mxu1 }
 0x103   : > { %1040 = vperm.xlu1 %1517, %v1419_v51   ;;  %v851_v52 = vpop.f32.mrf.mxu1 }
 0x104   : > { %v1426_v53 = vpop.f32.mrf.mxu0 }
 0x106   : > { %v932_v54 = vpop.f32.mrf.mxu0 }
 0x107   : > { %1037 = vperm.xlu1 %1517, %v851_v52   ;;  %v1433_v55 = vpop.f32.mrf.mxu1 }
 0x109   : > { %v1013_v56 = vpop.f32.mrf.mxu1 }
 0x10b   : > { %1046 = vperm.xlu1 %1517, %v1426_v53  }
 0x10f   : > { %1043 = vperm.xlu1 %1517, %v932_v54  }
 0x113   : > { %1049 = vperm.xlu1 %1517, %v1013_v56  }
 0x117   : > { %1052 = vperm.xlu1 %1517, %v1433_v55  }
 0x118   : > { %1559 = shalt.err (!%p1556_p6)
}
 0x119   : > { %s1560_s8 = scalar_lea.hbm %s1969_s28, 128  ;;  %s1564_s29 = scalar_lea.hbm %s2109_s2, 256 }
 0x11a   : > { %p1561_p7 = scmp.ne.s32.totalorder %s1969_s28, %s1560_s8  ;;  %p1565_p13 = scmp.lt.s32.totalorder %s1969_s28, %s2109_s2 }
 0x11b   : > { %p1566_p2 = scmp.lt.s32.totalorder %s1564_s29, %s1560_s8 }
 0x11c   : > { %p1562_p10 = pnand %p1561_p7, %p1773_p9 }
 0x11d   : > { %p1567_p8 = por %p1566_p2, %p1565_p13 }
 0x11e   : > { %p1563_p4 = pneg %p1562_p10 }
 0x120   : > { %p1568_p12 = pnand %p1567_p8, %p1563_p4 }
 0x122   : > { %1571 = shalt.err (!%p1568_p12)
}
 0x123   : > { %s2112_s5 = smov 64   ;;  %s1693_s7 = smov 4  }
 0x124   : > { %1437 = dma.vmem_to_hbm [thread:$0]  (%p1773_p9), %s1971_s11, 128, %s1969_s28, %s1973_s4, %s2112_s5, %s2112_s5, %s1693_s7  }
 0x125   : > { %s1347_s24 = sshll.u32 %s1674_s15, 9  ;;  %s1120_s29 = sshll.u32 %s1886_s6, 4  ;;  %s2006_s29 = int_to_ptr.vmem [resolvable:$true] %s1120_s29 }
 0x126   : > { %s2003_s21 = scalar_lea.hbm %s2108_s1, %s1347_s24  ;;  %s1097_s22 = scalar_lea.sflag [#allocation4], %s1808_s30 }
 0x127   : > { %s1572_s18 = scalar_lea.vmem %s2006_s29, 512  ;;  %s1694_s19 = smov [#allocation5]  }
 0x128   : > { %p1573_p0 = scmp.ne.s32.totalorder %s2006_s29, %s1572_s18  ;;  %s1576_s11 = sshll.u32 %s1694_s19, 4  ;;  %s1577_s11 = int_to_ptr.vmem [resolvable:$false] %s1576_s11 }
 0x129   : > { %s1578_s28 = scalar_lea.vmem %s1577_s11, 1024  ;;  %p1579_p5 = scmp.lt.s32.totalorder %s2006_s29, %s1577_s11 }
 0x12a   : > { %p1574_p1 = pnand %p1573_p0, %p1773_p9  ;;  %p1580_p6 = scmp.lt.s32.totalorder %s1578_s28, %s1572_s18 }
 0x12c   : > { %p1575_p3 = pneg %p1574_p1  ;;  %p1581_p7 = por %p1580_p6, %p1579_p5 }
 0x12e   : > { %p1582_p10 = pnand %p1581_p7, %p1575_p3 }
 0x130   : > { %1585 = shalt.err (!%p1582_p10)
}
 0x131   : > { %s1586_s6 = scalar_lea.hbm %s2003_s21, 512  ;;  %s1590_s19 = scalar_lea.hbm %s2108_s1, 1024 }
 0x132   : > { %p1587_p4 = scmp.ne.s32.totalorder %s2003_s21, %s1586_s6  ;;  %p1591_p8 = scmp.lt.s32.totalorder %s2003_s21, %s2108_s1 }
 0x133   : > { %p1592_p12 = scmp.lt.s32.totalorder %s1590_s19, %s1586_s6 }
 0x134   : > { %p1588_p13 = pnand %p1587_p4, %p1773_p9 }
 0x135   : > { %p1593_p0 = por %p1592_p12, %p1591_p8 }
 0x136   : > { %p1589_p2 = pneg %p1588_p13 }
 0x138   : > { %p1594_p1 = pnand %p1593_p0, %p1589_p2 }
 0x13a   : > { %1597 = shalt.err (!%p1594_p1)
}
 0x13b   : > { %s1695_s18 = smov 128   ;;  %s1696_s11 = smov 8  }
 0x13c   : > { %1436 = dma.vmem_to_hbm [thread:$0]  (%p1773_p9), %s2006_s29, 512, %s2003_s21, %s1097_s22, %s1695_s18, %s1695_s18, %s1696_s11  }
 0x13d   : > { %s1154_s30 = sshll.u32 %s1952_s10, 4  ;;  %s2053_s29 = scalar_lea.hbm %s2110_s3, %s1348_s23  ;;  %s2044_s30 = int_to_ptr.vmem [resolvable:$true] %s1154_s30 }
 0x13e   : > { %s1598_s22 = scalar_lea.vmem %s2044_s30, 128  ;;  %s1697_s28 = smov [#allocation8]  }
 0x13f   : > { %p1599_p3 = scmp.ne.s32.totalorder %s2044_s30, %s1598_s22  ;;  %s1602_s6 = sshll.u32 %s1697_s28, 4  ;;  %s1603_s6 = int_to_ptr.vmem [resolvable:$false] %s1602_s6 }
 0x140   : > { %s1604_s24 = scalar_lea.vmem %s1603_s6, 256  ;;  %p1605_p7 = scmp.lt.s32.totalorder %s2044_s30, %s1603_s6 }
 0x141   : > { %p1600_p5 = pnand %p1599_p3, %p1773_p9  ;;  %p1606_p10 = scmp.lt.s32.totalorder %s1604_s24, %s1598_s22 }
 0x143   : > { %p1601_p6 = pneg %p1600_p5  ;;  %p1607_p4 = por %p1606_p10, %p1605_p7 }
 0x145   : > { %p1608_p13 = pnand %p1607_p4, %p1601_p6 }
 0x17a   : > { %v1035_v57 = vpop.permute.xlu1 %1034 }
 0x17b   : > { %v1061_v5 = vrot.slane %v1035_v57, %v1933_v13 }
 0x17c   : > { %v1032_v62 = vpop.permute.xlu0 %1031 }
 0x17d   : > { %v1057_v2 = vrot.slane %v1032_v62, %v1931_v10 }
 0x17e   : > { %v1041_v58 = vpop.permute.xlu1 %1040 }
 0x17f   : > { %v1070_v3 = vrot.slane %v1041_v58, %v1933_v13  ;;  %v1062_v9 = vsel %vm664_vm6, %v1061_v5, %v1057_v2 }
 0x182   : > { %v1038_v59 = vpop.permute.xlu1 %1037 }
 0x183   : > { %v1066_v63 = vrot.slane %v1038_v59, %v1931_v10 }
 0x185   : > { %v1071_v6 = vsel %vm664_vm6, %v1070_v3, %v1066_v63 }
 0x186   : > { %v1047_v60 = vpop.permute.xlu1 %1046  ;;  %v1090_v14 = vsel %vm324_vm2, %v1071_v6, %v1062_v9 }
 0x187   : > { %v1079_v4 = vrot.slane %v1047_v60, %v1933_v13 }
 0x18a   : > { %v1044_v61 = vpop.permute.xlu1 %1043 }
 0x18b   : > { %v1075_v0 = vrot.slane %v1044_v61, %v1931_v10 }
 0x18d   : > { %v1080_v7 = vsel %vm664_vm6, %v1079_v4, %v1075_v0 }
 0x18e   : > { %v1050_v1 = vpop.permute.xlu1 %1049  ;;  %v1091_v15 = vsel %vm326_vm3, %v1080_v7, %v1090_v14 }
 0x18f   : > { %v1084_v11 = vrot.slane %v1050_v1, %v1931_v10 }
 0x192   : > { %v1053_v8 = vpop.permute.xlu1 %1052 }
 0x193   : > { %v1088_v12 = vrot.slane %v1053_v8, %v1933_v13 }
 0x195   : > { %v1089_v16 = vsel %vm664_vm6, %v1088_v12, %v1084_v11 }
 0x196   : > { %v1092_v10 = vsel %vm328_vm4, %v1089_v16, %v1091_v15 }
 0x197   : > { %1334 = vst.msk [vmem:[%s1952_s10 + $0x4] sm:$0xf] %vm331_vm5, %v1092_v10 }
 0x198   : > { %1611 = shalt.err (!%p1608_p13)
}
 0x199   : > { %s1612_s15 = scalar_lea.hbm %s2053_s29, 128  ;;  %s1616_s8 = scalar_lea.hbm %s2110_s3, 256 }
 0x19a   : > { %p1613_p2 = scmp.ne.s32.totalorder %s2053_s29, %s1612_s15  ;;  %p1617_p0 = scmp.lt.s32.totalorder %s2053_s29, %s2110_s3 }
 0x19b   : > { %p1618_p1 = scmp.lt.s32.totalorder %s1616_s8, %s1612_s15 }
 0x19c   : > { %p1614_p8 = pnand %p1613_p2, %p1773_p9 }
 0x19d   : > { %p1619_p3 = por %p1618_p1, %p1617_p0 }
 0x19e   : > { %p1615_p12 = pneg %p1614_p8 }
 0x1a0   : > { %p1620_p5 = pnand %p1619_p3, %p1615_p12 }
 0x1a2   : > { %1623 = shalt.err (!%p1620_p5)
}
 0x1a3   : > { %s2118_s18 = smov 64  }
 0x1a4   : > { %1438 = dma.vmem_to_hbm [thread:$0]  (%p1773_p9), %s2044_s30, 128, %s2053_s29, %s1973_s4, %s2118_s18, %s2118_s18, %s1693_s7  }
 0x1a5 PF: > { %s1169_s11 = sand.u32 1, %s1662_s12   ;;  %p2119_p6 = scmp.ge.s32.totalorder %s1682_s17, 2 }
 0x1a6   : > { %s1170_s5 = scalar_lea.sflag [#allocation4], %s1169_s11 }
 0x1a7   : > { %p1447_p7 = pnand %p2119_p6, %p1782_p11 }
 0x1a9   : > { %p1448_p10 = pneg %p1447_p7 }
 0x1ab   : > { %1653 = dma.done.wait (%p1448_p10), %s1170_s5, 512  }
 0x1ac   : > { %1655 = vsyncadd (%p1448_p10), %s1170_s5, 4294966784  ;;  %s2120_s25 = sadd.s32 4294967294, %s1682_s17  }
 0x1ad   : > { %s1178_s21 = sand.u32 1, %s2120_s25  }
 0x1ae   : > { %s1179_s22 = scalar_lea.sflag [#allocation7], %s1178_s21 }
 0x1af   : > { %1657 = dma.done.wait (%p1448_p10), %s1179_s22, 256  }
 0x1b0   : > { %1659 = vsyncadd (%p1448_p10), %s1179_s22, 4294967040  ;;  %s23_s17 = sadd.s32 1, %s1682_s17   ;;  %s2121_s12 = smov %s1666_s13 }
 0x1b1   : > { %p20_p9 = scmp.ge.s32.totalorder %s23_s17, 4   ;;  %s2122_s13 = smov %s1670_s14 }
 0x1b2   : > { %s2123_s14 = smov %s1780_s26  ;;  %s2124_s15 = smov %s1678_s16 }
 0x1b3   : > { %s2125_s16 = smov %s2127_s20  ;;  %22 = sbr.rel (!%p20_p9) target bundleno = 8 (0x8), region = 113 }
 0x1b8   :  { %1193 = vsyncpa [#allocation3], 1 }
 0x1b9   :  { %1195 = vsyncpa [#allocation3 + $0x1], 1 }
 0x1ba   :  { %1196 = vsyncpa [#allocation4], 1 }
 0x1bb   :  { %1198 = vsyncpa [#allocation4 + $0x1], 1 }
 0x1bc   :  { %1199 = vsyncpa [#allocation7], 1 }
 0x1bd   :  { %1201 = vsyncpa [#allocation7 + $0x1], 1 }

</bundles_post_ra>
